<compile_context>
chip_gen: v7x
topology: tpu7x:2x2x1
jax: 0.10.0
libtpu: 0.0.40
codegen_flags: <defaults>
</compile_context>

<pallas_src>
import functools

import jax
import jax.numpy as jnp
from jax.experimental import pallas as pl
from jax.experimental.pallas import tpu as pltpu

H1 = 256
H2 = 128
LANE = 128       # lane width / MXU-friendly padding target
TB_MAX = 512     # rows per grid step (sublane-aligned); amortizes per-step overhead


def _round_up(x, m):
    return (x + m - 1) // m * m


def _wide_mlp_kernel(x_ref, w1_ref, b1_ref, w2_ref, b2_ref, w3_ref, b3_ref, o_ref):
    # Layer 1: (TB, Kp) bf16 @ (Kp, 256) bf16 -> f32 acc; bias + ReLU in f32 (VPU).
    h1 = jnp.dot(x_ref[...], w1_ref[...], preferred_element_type=jnp.float32)
    h1 = jnp.maximum(h1 + b1_ref[...], 0.0)
    # Layer 2: (TB, 256) bf16 @ (256, 128) bf16 -> f32 acc.
    h2 = jnp.dot(h1.astype(jnp.bfloat16), w2_ref[...], preferred_element_type=jnp.float32)
    h2 = jnp.maximum(h2 + b2_ref[...], 0.0)
    # Layer 3: (TB, 128) bf16 @ (128, Np) bf16 -> f32 acc; lane-dense store (Np >= 128).
    out = jnp.dot(h2.astype(jnp.bfloat16), w3_ref[...], preferred_element_type=jnp.float32)
    o_ref[...] = (out + b3_ref[...]).astype(o_ref.dtype)


@functools.partial(jax.jit)
def wide_model_forward(x, params):
    """x: (B, input_size) float32; params: dict of w1,b1,w2,b2,w3,b3 (f32)."""
    B, K = x.shape
    out_size = params["w3"].shape[1]

    Kp = _round_up(max(K, LANE), LANE)          # pad layer-1 contraction dim to 128
    Np = _round_up(max(out_size, LANE), LANE)   # pad output feature dim to 128
    TB = min(TB_MAX, _round_up(B, 8))           # sublane-aligned batch tile
    Bp = _round_up(B, TB)

    # Pad + cast matmul operands to bf16; biases stay f32 for f32 bias-add/ReLU.
    xp = jnp.zeros((Bp, Kp), jnp.bfloat16).at[:B, :K].set(x.astype(jnp.bfloat16))
    w1 = jnp.zeros((Kp, H1), jnp.bfloat16).at[:K, :].set(params["w1"].astype(jnp.bfloat16))
    w2 = params["w2"].astype(jnp.bfloat16)
    w3 = jnp.zeros((H2, Np), jnp.bfloat16).at[:, :out_size].set(
        params["w3"].astype(jnp.bfloat16))
    b1 = params["b1"].astype(jnp.float32)
    b2 = params["b2"].astype(jnp.float32)
    b3 = jnp.zeros((1, Np), jnp.float32).at[:, :out_size].set(
        params["b3"].astype(jnp.float32))

    grid = (Bp // TB,)

    # Weights/biases: same block for every grid step -> VMEM-resident, DMA'd once.
    def resident(a):
        return pl.BlockSpec(a.shape, lambda i: (0, 0))

    flops = 2 * Bp * (Kp * H1 + H1 * H2 + H2 * Np)
    bytes_accessed = (xp.size * 2 + w1.size * 2 + w2.size * 2 + w3.size * 2
                      + b1.size * 4 + b2.size * 4 + b3.size * 4
                      + Bp * Np * 4)

    out = pl.pallas_call(
        _wide_mlp_kernel,
        out_shape=jax.ShapeDtypeStruct((Bp, Np), jnp.float32),
        grid=grid,
        in_specs=[
            pl.BlockSpec((TB, Kp), lambda i: (i, 0)),   # activation tile, pipelined per step
            resident(w1), resident(b1),
            resident(w2), resident(b2),
            resident(w3), resident(b3),
        ],
        out_specs=pl.BlockSpec((TB, Np), lambda i: (i, 0)),
        compiler_params=pltpu.CompilerParams(
            dimension_semantics=("parallel",),          # batch tiles split across TCs on v7x
        ),
        cost_estimate=pl.CostEstimate(
            flops=flops, transcendentals=0, bytes_accessed=bytes_accessed),
    )(xp, w1, b1, w2, b2, w3, b3)

    return out[:B, :out_size]


def init_params(key, input_size, output_size):
    """Deterministic init mimicking nn.Linear default (uniform +/- 1/sqrt(fan_in))."""
    ks = jax.random.split(key, 6)

    def linear(kw, kb, fan_in, fan_out):
        bound = 1.0 / jnp.sqrt(jnp.float32(fan_in))
        w = jax.random.uniform(kw, (fan_in, fan_out), jnp.float32, -bound, bound)
        b = jax.random.uniform(kb, (1, fan_out), jnp.float32, -bound, bound)
        return w, b

    w1, b1 = linear(ks[0], ks[1], input_size, H1)
    w2, b2 = linear(ks[2], ks[3], H1, H2)
    w3, b3 = linear(ks[4], ks[5], H2, output_size)
    return {"w1": w1, "b1": b1, "w2": w2, "b2": b2, "w3": w3, "b3": b3}


if __name__ == "__main__":
    input_size = 32
    output_size = 16
    batch = 8

    key = jax.random.PRNGKey(0)
    k_x, k_p = jax.random.split(key)
    x = jax.random.normal(k_x, (batch, input_size), dtype=jnp.float32)
    params = init_params(k_p, input_size, output_size)

    out = wide_model_forward(x, params)
    jax.block_until_ready(out)
    assert out.shape == (batch, output_size)

    # Reference with identical bf16-operand / f32-accumulate math (tight check).
    xb = x.astype(jnp.bfloat16)
    w1b = params["w1"].astype(jnp.bfloat16)
    w2b = params["w2"].astype(jnp.bfloat16)
    w3b = params["w3"].astype(jnp.bfloat16)
    h1 = jnp.maximum(jnp.dot(xb, w1b, preferred_element_type=jnp.float32) + params["b1"], 0.0)
    h2 = jnp.maximum(jnp.dot(h1.astype(jnp.bfloat16), w2b,
                             preferred_element_type=jnp.float32) + params["b2"], 0.0)
    ref_bf16 = jnp.dot(h2.astype(jnp.bfloat16), w3b,
                       preferred_element_type=jnp.float32) + params["b3"]
    assert jnp.allclose(out, ref_bf16, atol=1e-2, rtol=1e-2)

    # Looser sanity check against the pure f32 forward (original module semantics).
    h1f = jnp.maximum(x @ params["w1"] + params["b1"], 0.0)
    h2f = jnp.maximum(h1f @ params["w2"] + params["b2"], 0.0)
    ref_f32 = h2f @ params["w3"] + params["b3"]
    assert jnp.allclose(out, ref_f32, atol=5e-2, rtol=5e-2)

    print("KERNEL_OK")
</pallas_src>

<mosaic_0001>
module attributes {stable_mosaic.version = 11 : i64} {
  func.func @_wide_mlp_kernel(%arg0: i32, %arg1: memref<8x128xbf16, #tpu.memory_space<vmem>>, %arg2: memref<128x256xbf16, #tpu.memory_space<vmem>>, %arg3: memref<1x256xf32, #tpu.memory_space<vmem>>, %arg4: memref<256x128xbf16, #tpu.memory_space<vmem>>, %arg5: memref<1x128xf32, #tpu.memory_space<vmem>>, %arg6: memref<128x128xbf16, #tpu.memory_space<vmem>>, %arg7: memref<1x128xf32, #tpu.memory_space<vmem>>, %arg8: memref<8x128xf32, #tpu.memory_space<vmem>>) attributes {dimension_semantics = [#tpu.dimension_semantics<parallel>], iteration_bounds = array<i64: 1>, scalar_prefetch = 0 : i64, scratch_operands = 0 : i64, tpu.core_type = #tpu.core_type<tc>, window_params = [{transform_indices = @transform_0, window_bounds = array<i64: 8, 128>}, {pipeline_mode = #tpu.pipeline_mode<synchronous>, transform_indices = @transform_1, window_bounds = array<i64: 128, 256>}, {pipeline_mode = #tpu.pipeline_mode<synchronous>, transform_indices = @transform_2, window_bounds = array<i64: 1, 256>}, {pipeline_mode = #tpu.pipeline_mode<synchronous>, transform_indices = @transform_3, window_bounds = array<i64: 256, 128>}, {pipeline_mode = #tpu.pipeline_mode<synchronous>, transform_indices = @transform_4, window_bounds = array<i64: 1, 128>}, {pipeline_mode = #tpu.pipeline_mode<synchronous>, transform_indices = @transform_5, window_bounds = array<i64: 128, 128>}, {pipeline_mode = #tpu.pipeline_mode<synchronous>, transform_indices = @transform_6, window_bounds = array<i64: 1, 128>}, {transform_indices = @transform_7, window_bounds = array<i64: 8, 128>}]} {
    %c0 = arith.constant 0 : index
    %c0_0 = arith.constant 0 : index
    %0 = vector.load %arg1[%c0, %c0_0] : memref<8x128xbf16, #tpu.memory_space<vmem>>, vector<8x128xbf16>
    %c0_1 = arith.constant 0 : index
    %c0_2 = arith.constant 0 : index
    %1 = vector.load %arg2[%c0_1, %c0_2] : memref<128x256xbf16, #tpu.memory_space<vmem>>, vector<128x256xbf16>
    %cst = arith.constant dense<0.000000e+00> : vector<8x256xf32>
    %2 = tpu.matmul %0, %1, %cst {dimension_numbers = #tpu.dot_dimension_numbers<[1], [0], [0], [1], [0, 0, 1, 1], [], []>} : vector<8x128xbf16>, vector<128x256xbf16>, vector<8x256xf32> -> vector<8x256xf32>
    %c0_3 = arith.constant 0 : index
    %c0_4 = arith.constant 0 : index
    %3 = vector.load %arg3[%c0_3, %c0_4] : memref<1x256xf32, #tpu.memory_space<vmem>>, vector<1x256xf32>
    %4 = vector.broadcast %3 : vector<1x256xf32> to vector<8x256xf32>
    %5 = arith.addf %2, %4 : vector<8x256xf32>
    %cst_5 = arith.constant 0.000000e+00 : f32
    %6 = vector.broadcast %cst_5 : f32 to vector<8x256xf32>
    %7 = arith.maximumf %5, %6 : vector<8x256xf32>
    %8 = arith.truncf %7 : vector<8x256xf32> to vector<8x256xbf16>
    %c0_6 = arith.constant 0 : index
    %c0_7 = arith.constant 0 : index
    %9 = vector.load %arg4[%c0_6, %c0_7] : memref<256x128xbf16, #tpu.memory_space<vmem>>, vector<256x128xbf16>
    %cst_8 = arith.constant dense<0.000000e+00> : vector<8x128xf32>
    %10 = tpu.matmul %8, %9, %cst_8 {dimension_numbers = #tpu.dot_dimension_numbers<[1], [0], [0], [1], [0, 0, 1, 1], [], []>} : vector<8x256xbf16>, vector<256x128xbf16>, vector<8x128xf32> -> vector<8x128xf32>
    %c0_9 = arith.constant 0 : index
    %c0_10 = arith.constant 0 : index
    %11 = vector.load %arg5[%c0_9, %c0_10] : memref<1x128xf32, #tpu.memory_space<vmem>>, vector<1x128xf32>
    %12 = vector.broadcast %11 : vector<1x128xf32> to vector<8x128xf32>
    %13 = arith.addf %10, %12 : vector<8x128xf32>
    %cst_11 = arith.constant 0.000000e+00 : f32
    %14 = vector.broadcast %cst_11 : f32 to vector<8x128xf32>
    %15 = arith.maximumf %13, %14 : vector<8x128xf32>
    %16 = arith.truncf %15 : vector<8x128xf32> to vector<8x128xbf16>
    %c0_12 = arith.constant 0 : index
    %c0_13 = arith.constant 0 : index
    %17 = vector.load %arg6[%c0_12, %c0_13] : memref<128x128xbf16, #tpu.memory_space<vmem>>, vector<128x128xbf16>
    %cst_14 = arith.constant dense<0.000000e+00> : vector<8x128xf32>
    %18 = tpu.matmul %16, %17, %cst_14 {dimension_numbers = #tpu.dot_dimension_numbers<[1], [0], [0], [1], [0, 0, 1, 1], [], []>} : vector<8x128xbf16>, vector<128x128xbf16>, vector<8x128xf32> -> vector<8x128xf32>
    %c0_15 = arith.constant 0 : index
    %c0_16 = arith.constant 0 : index
    %19 = vector.load %arg7[%c0_15, %c0_16] : memref<1x128xf32, #tpu.memory_space<vmem>>, vector<1x128xf32>
    %20 = vector.broadcast %19 : vector<1x128xf32> to vector<8x128xf32>
    %21 = arith.addf %18, %20 : vector<8x128xf32>
    %c0_17 = arith.constant 0 : index
    %c0_18 = arith.constant 0 : index
    %22 = vector.load %arg8[%c0_17, %c0_18] : memref<8x128xf32, #tpu.memory_space<vmem>>, vector<8x128xf32>
    tpu.vector_store %arg8[%c0_17, %c0_18], %21 {strides = array<i32>} : memref<8x128xf32, #tpu.memory_space<vmem>>, vector<8x128xf32>,
    return
  }
  func.func @transform_0(%arg0: i32) -> (i32, i32) {
    %c0_i32 = arith.constant 0 : i32
    %c0_i32_0 = arith.constant 0 : i32
    return %arg0, %c0_i32 : i32, i32
  }
  func.func @transform_1(%arg0: i32) -> (i32, i32) {
    %c0_i32 = arith.constant 0 : i32
    %c0_i32_0 = arith.constant 0 : i32
    %c0_i32_1 = arith.constant 0 : i32
    return %c0_i32, %c0_i32_0 : i32, i32
  }
  func.func @transform_2(%arg0: i32) -> (i32, i32) {
    %c0_i32 = arith.constant 0 : i32
    %c0_i32_0 = arith.constant 0 : i32
    %c0_i32_1 = arith.constant 0 : i32
    return %c0_i32, %c0_i32_0 : i32, i32
  }
  func.func @transform_3(%arg0: i32) -> (i32, i32) {
    %c0_i32 = arith.constant 0 : i32
    %c0_i32_0 = arith.constant 0 : i32
    %c0_i32_1 = arith.constant 0 : i32
    return %c0_i32, %c0_i32_0 : i32, i32
  }
  func.func @transform_4(%arg0: i32) -> (i32, i32) {
    %c0_i32 = arith.constant 0 : i32
    %c0_i32_0 = arith.constant 0 : i32
    %c0_i32_1 = arith.constant 0 : i32
    return %c0_i32, %c0_i32_0 : i32, i32
  }
  func.func @transform_5(%arg0: i32) -> (i32, i32) {
    %c0_i32 = arith.constant 0 : i32
    %c0_i32_0 = arith.constant 0 : i32
    %c0_i32_1 = arith.constant 0 : i32
    return %c0_i32, %c0_i32_0 : i32, i32
  }
  func.func @transform_6(%arg0: i32) -> (i32, i32) {
    %c0_i32 = arith.constant 0 : i32
    %c0_i32_0 = arith.constant 0 : i32
    %c0_i32_1 = arith.constant 0 : i32
    return %c0_i32, %c0_i32_0 : i32, i32
  }
  func.func @transform_7(%arg0: i32) -> (i32, i32) {
    %c0_i32 = arith.constant 0 : i32
    %c0_i32_0 = arith.constant 0 : i32
    return %arg0, %c0_i32 : i32, i32
  }
}

</mosaic_0001>

<bundles_post_ra>
// kernel: wide_model_forward.1
= control target key start
LH: loop header
LB: loop body
LE: loop exit
PB: predicated region body
PF: predicated region fallthrough
CT: control target
= control target key end

     0   :  { %v654_v2 = vmov 0   ;;  %s842_s0 = inlined_call_operand.vmem [shape: bf16[8,128], index: 0, kind: input, shape index: {}]   ;;  %s843_s1 = inlined_call_operand.vmem [shape: bf16[128,256], index: 1, kind: input, shape index: {}]   ;;  %s844_s2 = inlined_call_operand.vmem [shape: f32[1,256], index: 2, kind: input, shape index: {}]   ;;  %s845_s3 = inlined_call_operand.vmem [shape: bf16[256,128], index: 3, kind: input, shape index: {}]   ;;  %s846_s4 = inlined_call_operand.vmem [shape: f32[1,128], index: 4, kind: input, shape index: {}]   ;;  %s847_s5 = inlined_call_operand.vmem [shape: bf16[128,128], index: 5, kind: input, shape index: {}]   ;;  %s848_s6 = inlined_call_operand.vmem [shape: f32[1,128], index: 6, kind: input, shape index: {}]   ;;  %s849_s7 = inlined_call_operand.hbm [shape: f32[8,128], index: 7, kind: output, shape index: {}]  }
   0x1   :  { %v582_v0 = vld [vmem:[%s843_s1 + $0x4] ss:$8 sps:$4 sm:$0xff]   ;;  %v584_v1 = vld [vmem:[%s843_s1] ss:$8 sps:$4 sm:$0xff]   ;;  %169 = vmatprep.mubr.bf16.mxu0 %v654_v2  ;;  %v585_v3 = vld [vmem:[%s843_s1 + $0x14] ss:$8 sps:$4 sm:$0xff]  }
   0x2   :  { %137 = vmatprep.subr.bf16.mxu0 %v582_v0  ;;  %v587_v4 = vld [vmem:[%s843_s1 + $0x10] ss:$8 sps:$4 sm:$0xff]   ;;  %v588_v5 = vld [vmem:[%s843_s1 + $0x24] ss:$8 sps:$4 sm:$0xff]   ;;  %v590_v6 = vld [vmem:[%s843_s1 + $0x20] ss:$8 sps:$4 sm:$0xff]  }
   0x3   :  { %138 = vmatpush1.bf16.msra.mxu0 %v584_v1  ;;  %v591_v7 = vld [vmem:[%s843_s1 + $0x34] ss:$8 sps:$4 sm:$0xff]   ;;  %v593_v8 = vld [vmem:[%s843_s1 + $0x30] ss:$8 sps:$4 sm:$0xff]   ;;  %v594_v9 = vld [vmem:[%s843_s1 + $0x44] ss:$8 sps:$4 sm:$0xff]  }
   0x4   :  { %139 = vmatprep.subr.bf16.mxu0 %v585_v3  ;;  %v606_v10 = vld [vmem:[%s845_s3 + $0x40] sm:$0xff]   ;;  %v608_v13 = vld [vmem:[%s845_s3 + $0x48] sm:$0xff]   ;;  %v610_v15 = vld [vmem:[%s845_s3 + $0x50] sm:$0xff]  }
   0x5   :  { %v607_v11 = vld [vmem:[%s845_s3] sm:$0xff]   ;;  %527 = vmatprep.subr.bf16.mxu1 %v606_v10  ;;  %v609_v14 = vld [vmem:[%s845_s3 + $0x8] sm:$0xff]   ;;  %v597_v16 = vld [vmem:[%s843_s1 + $0x54] ss:$8 sps:$4 sm:$0xff]  }
   0x6   :  { %v596_v12 = vld [vmem:[%s843_s1 + $0x40] ss:$8 sps:$4 sm:$0xff]   ;;  %528 = vmatpush3.bf16.msra.mxu1 %v607_v11  ;;  %v599_v17 = vld [vmem:[%s843_s1 + $0x50] ss:$8 sps:$4 sm:$0xff]   ;;  %v600_v20 = vld [vmem:[%s843_s1 + $0x64] ss:$8 sps:$4 sm:$0xff]  }
   0x7   :  { %140 = vmatpush1.bf16.msra.mxu0 %v587_v4  ;;  %529 = vmatprep.subr.bf16.mxu1 %v608_v13  ;;  %v611_v18 = vld [vmem:[%s845_s3 + $0x10] sm:$0xff]   ;;  %v612_v19 = vld [vmem:[%s845_s3 + $0x58] sm:$0xff]   ;;  %v602_v21 = vld [vmem:[%s843_s1 + $0x60] ss:$8 sps:$4 sm:$0xff]  }
   0x8   :  { %141 = vmatprep.subr.bf16.mxu0 %v588_v5  ;;  %v603_v22 = vld [vmem:[%s843_s1 + $0x74] ss:$8 sps:$4 sm:$0xff]   ;;  %v614_v24 = vld [vmem:[%s845_s3 + $0x60] sm:$0xff]   ;;  %v605_v26 = vld [vmem:[%s843_s1 + $0x70] ss:$8 sps:$4 sm:$0xff]  }
   0x9   :  { %v613_v23 = vld [vmem:[%s845_s3 + $0x18] sm:$0xff]   ;;  %v615_v25 = vld [vmem:[%s845_s3 + $0x20] sm:$0xff]   ;;  %v616_v27 = vld [vmem:[%s845_s3 + $0x68] sm:$0xff]  }
   0xa   :  { %530 = vmatpush3.bf16.msra.mxu1 %v609_v14  ;;  %v617_v28 = vld [vmem:[%s845_s3 + $0x28] sm:$0xff]   ;;  %v28_v29 = vld [vmem:[%s842_s0] sm:$0xf] }
   0xb   :  { %142 = vmatpush1.bf16.msra.mxu0 %v590_v6  ;;  %531 = vmatprep.subr.bf16.mxu1 %v610_v15 }
   0xc   :  { %143 = vmatprep.subr.bf16.mxu0 %v591_v7 }
   0xe   :  { %532 = vmatpush3.bf16.msra.mxu1 %v611_v18 }
   0xf   :  { %144 = vmatpush1.bf16.msra.mxu0 %v593_v8  ;;  %533 = vmatprep.subr.bf16.mxu1 %v612_v19 }
  0x10   :  { %145 = vmatprep.subr.bf16.mxu0 %v594_v9 }
  0x12   :  { %534 = vmatpush3.bf16.msra.mxu1 %v613_v23 }
  0x13   :  { %146 = vmatpush1.bf16.msra.mxu0 %v596_v12  ;;  %535 = vmatprep.subr.bf16.mxu1 %v614_v24 }
  0x14   :  { %147 = vmatprep.subr.bf16.mxu0 %v597_v16 }
  0x16   :  { %536 = vmatpush3.bf16.msra.mxu1 %v615_v25 }
  0x17   :  { %148 = vmatpush1.bf16.msra.mxu0 %v599_v17  ;;  %537 = vmatprep.subr.bf16.mxu1 %v616_v27 }
  0x18   :  { %149 = vmatprep.subr.bf16.mxu0 %v600_v20 }
  0x1b   :  { %150 = vmatpush1.bf16.msra.mxu0 %v602_v21 }
  0x1c   :  { %151 = vmatprep.subr.bf16.mxu0 %v603_v22 }
  0x1f   :  { %152 = vmatpush1.bf16.msra.mxu0 %v605_v26 }
  0x20   :  { %12 = vsyncpa [#allocation3], 0  ;;  %538 = vmatpush3.bf16.msra.mxu1 %v617_v28  ;;  %v618_v30 = vld [vmem:[%s845_s3 + $0x70] sm:$0xff]   ;;  %v620_v32 = vld [vmem:[%s845_s3 + $0x78] sm:$0xff]   ;;  %v655_v35 = vmov 0.0   ;;  %v47_v41 = vlaneseq  ;;  %vm656_vm0 = vmmov 0  }
  0x21   :  { %v619_v31 = vld [vmem:[%s845_s3 + $0x30] sm:$0xff]   ;;  %539 = vmatprep.subr.bf16.mxu1 %v618_v30  ;;  %v621_v33 = vld [vmem:[%s845_s3 + $0x38] sm:$0xff]   ;;  %v622_v34 = vld [vmem:[%s847_s5] sm:$0xff]   ;;  %558 = vmatprep.subr.bf16.mxu0 %v655_v35 }
  0x22   :  { %170 = vmatmul.mubr.bf16.vlgmr.msra.gmra.mrb[0].mxu0 %v28_v29  ;;  %v623_v36 = vld [vmem:[%s847_s5 + $0x8] sm:$0xff]   ;;  %v624_v37 = vld [vmem:[%s847_s5 + $0x10] sm:$0xff]   ;;  %v625_v38 = vld [vmem:[%s847_s5 + $0x18] sm:$0xff]   ;;  %v48_v42 = vshrl.u32 %v47_v41, 7 }
  0x23   :  { %559 = vmatpush3.bf16.msra.mxu0 %v622_v34  ;;  %v626_v39 = vld [vmem:[%s847_s5 + $0x20] sm:$0xff]   ;;  %v627_v40 = vld [vmem:[%s847_s5 + $0x28] sm:$0xff]   ;;  %v628_v58 = vld [vmem:[%s847_s5 + $0x30] sm:$0xff]   ;;  %574 = vmatprep.mubr.msk.bf16.mxu0 %vm656_vm0, %v655_v35 }
  0x24   :  { %540 = vmatpush3.bf16.msra.mxu1 %v619_v31  ;;  %560 = vmatprep.subr.bf16.mxu0 %v655_v35  ;;  %v49_v43 = vsub.s32 0, %v48_v42  ;;  %v45_v44 = vld [vmem:[%s844_s2] sm:$0x3]  ;;  %v53_v45 = vsub.s32 1, %v48_v42  ;;  %v629_v59 = vld [vmem:[%s847_s5 + $0x38] sm:$0xff]   ;;  %s657_s5 = smov [#allocation2]  }
  0x25   :  { %541 = vmatprep.subr.bf16.mxu1 %v620_v32  ;;  %v501_v61 = vld [vmem:[%s846_s4] ss:$0 sm:$0xff]  ;;  %s477_s15 = sshll.u32 %s657_s5, 4  ;;  %s478_s15 = int_to_ptr.vmem [resolvable:$true] %s477_s15 }
  0x26   :  { %v50_v46 = vrot.slane %v45_v44, %v49_v43  ;;  %v54_v47 = vrot.slane %v45_v44, %v53_v45  ;;  %v518_v5 = vld [vmem:[%s848_s6] ss:$0 sm:$0xff]  ;;  %s630_s4 = scalar_lea.vmem %s478_s15, 128  ;;  %p635_p1 = scmp.lt.s32.totalorder %s478_s15, %s478_s15 }
  0x27   :  { %561 = vmatpush3.bf16.msra.mxu0 %v623_v36  ;;  %p631_p0 = scmp.ne.s32.totalorder %s478_s15, %s630_s4  ;;  %p636_p2 = scmp.lt.s32.totalorder %s630_s4, %s630_s4 }
  0x28   :  { %542 = vmatpush3.bf16.msra.mxu1 %v621_v33  ;;  %562 = vmatprep.subr.bf16.mxu0 %v655_v35 }
  0x29   :  { %p637_p3 = por %p636_p2, %p635_p1 }
  0x2b   :  { %563 = vmatpush3.bf16.msra.mxu0 %v624_v37  ;;  %p638_p4 = pnand %p637_p3, %p631_p0 }
  0x2c   :  { %564 = vmatprep.subr.bf16.mxu0 %v655_v35 }
  0x2f   :  { %565 = vmatpush3.bf16.msra.mxu0 %v625_v38 }
  0x30   :  { %566 = vmatprep.subr.bf16.mxu0 %v655_v35 }
  0x33   :  { %567 = vmatpush3.bf16.msra.mxu0 %v626_v39 }
  0x34   :  { %568 = vmatprep.subr.bf16.mxu0 %v655_v35 }
  0x37   :  { %569 = vmatpush3.bf16.msra.mxu0 %v627_v40 }
  0x38   :  { %570 = vmatprep.subr.bf16.mxu0 %v655_v35 }
  0x3b   :  { %571 = vmatpush3.bf16.msra.mxu0 %v628_v58 }
  0x3c   :  { %572 = vmatprep.subr.bf16.mxu0 %v655_v35 }
  0x3f   :  { %573 = vmatpush3.bf16.msra.mxu0 %v629_v59 }
  0xf5   :  { %v171_v48 = vpop.f32.mrb[0].mxu0 }
  0xf6   :  { %v172_v49 = vadd.f32 %v171_v48, %v50_v46  ;;  %v173_v50 = vpop.f32.mrb[1].mxu0 }
  0xf7   :  { %v174_v51 = vadd.f32 %v173_v50, %v54_v47  ;;  %v175_v52 = vpop.f32.mrb[2].mxu0 }
  0xf8   :  { %v178_v53 = vmax.f32 %v172_v49, 0.0  ;;  %v176_v54 = vpop.f32.mrb[3].mxu0 }
  0xf9   :  { %v179_v55 = vmax.f32 %v174_v51, 0.0 }
  0xfa   :  { %v180_v57 = vpack.c.bf16 %v178_v53, %v178_v53 }
  0xfb   :  { %v181_v56 = vpack.c.bf16 %v179_v55, %v179_v55 }
  0xfd   :  { %349 = vmatprep.mubr.bf16.mxu1 %v181_v56 }
  0xfe   :  { %350 = vmatmul.mubr.bf16.vlgmr.msra.gmra.mrb[0].mxu1 %v180_v57 }
 0x1d1   :  { %v543_v60 = vpop.f32.mrb[0].mxu1 }
 0x1d2   :  { %v544_v62 = vpop.f32.mrb[1].mxu1 }
 0x1d3   :  { %v545_v63 = vadd.f32 %v544_v62, %v543_v60  ;;  %v546_v0 = vpop.f32.mrb[2].mxu1 }
 0x1d4   :  { %v547_v1 = vpop.f32.mrb[3].mxu1 }
 0x1d5   :  { %v352_v2 = vadd.f32 %v545_v63, %v501_v61 }
 0x1d7   :  { %v357_v3 = vmax.f32 %v352_v2, 0.0 }
 0x1d9   :  { %v358_v4 = vpack.c.bf16 %v357_v3, %v357_v3 }
 0x1db   :  { %575 = vmatmul.mubr.bf16.vlgmr.msra.gmra.mrb[4].mxu0 %v358_v4 }
 0x2ae   :  { %v464_v6 = vpop.f32.mrb[4].mxu0 }
 0x2af   :  { %v465_v7 = vadd.f32 %v518_v5, %v464_v6  ;;  %v576_v8 = vpop.f32.mrb[5].mxu0 }
 0x2b0   :  { %v467_v9 = vpop.f32.mrb[6].mxu0 }
 0x2b1   :  { %470 = vst [vmem:[#allocation2] sm:$0xff] %v465_v7  ;;  %v577_v10 = vpop.f32.mrb[7].mxu0 }
 0x2b2   :  { %641 = shalt.err (!%p638_p4)
}
 0x2b3   :  { %s642_s6 = scalar_lea.hbm %s849_s7, 128 }
 0x2b4   :  { %p643_p5 = scmp.ne.s32.totalorder %s849_s7, %s642_s6  ;;  %p646_p6 = scmp.lt.u32.totalorder %s642_s6, %s849_s7 }
 0x2b6   :  { %p648_p7 = pnand %p646_p6, %p643_p5 }
 0x2b8   :  { %651 = shalt.err (!%p648_p7)
}
 0x2b9   :  { %480 = dma.vmem_to_hbm [thread:$0]  %s478_s15, 128, %s849_s7, [#allocation3]  }
 0x2ba   :  { %652 = dma.done.wait [#allocation3], 128  }
 0x2bb   :  { %653 = vsyncadd [#allocation3], 4294967168 }
 0x2bc   :  { %484 = vsyncpa [#allocation3], 1 }

</bundles_post_ra>
